<compile_context>
chip_gen: v7x
topology: tpu7x:2x2x1
jax: 0.10.0
libtpu: 0.0.40
codegen_flags: <defaults>
</compile_context>

<pallas_src>
import functools
import math

import jax
import jax.numpy as jnp
from jax.experimental import pallas as pl
from jax.experimental.pallas import tpu as pltpu


def _round_up(x: int, m: int) -> int:
    return ((x + m - 1) // m) * m


def _largest_row_factor(d: int) -> int:
    """Largest f in {8,4,2,1} dividing d (sublane packing via free reshape)."""
    for f in (8, 4, 2):
        if d % f == 0:
            return f
    return 1


def _pick_row_tile(R: int, sublane_q: int, cap: int) -> int:
    """Divisor of R that is a multiple of 8 (preferably of sublane_q), <= cap,
    yielding >= 2 row blocks (megacore split); falls back to the full R."""
    quanta = (sublane_q,) if sublane_q == 8 else (sublane_q, 8)
    for q in quanta:
        t = min(cap, R // 2)
        t -= t % q
        while t >= q:
            if R % t == 0:
                return t
            t -= q
    return R


def _diffusion_loss_kernel(pred_ref, tgt_ref, out_ref, *, loss_type: str,
                           huber_delta: float, valid_cols: int, td: int,
                           ragged: bool):
    j = pl.program_id(1)

    @pl.when(j == 0)
    def _init():
        out_ref[...] = jnp.zeros_like(out_ref)

    pred = pred_ref[...].astype(jnp.float32)   # [TR, TD]
    tgt = tgt_ref[...].astype(jnp.float32)     # [TR, TD]
    diff = pred - tgt

    if loss_type == "mse":
        elem = diff * diff
    elif loss_type == "mae":
        elem = jnp.abs(diff)
    elif loss_type == "huber":
        ad = jnp.abs(diff)
        elem = jnp.where(ad <= huber_delta,
                         0.5 * diff * diff,
                         huber_delta * (ad - 0.5 * huber_delta))
    else:
        raise ValueError(f"Unknown loss type: {loss_type}")

    if ragged:
        # Boundary-block columns beyond the real array hold garbage; mask them.
        col = j * td + jax.lax.broadcasted_iota(jnp.int32, elem.shape, 1)
        elem = jnp.where(col < valid_cols, elem, 0.0)

    # Accumulate raw per-row partial sums directly into the resident output.
    out_ref[...] += jnp.sum(elem, axis=1, keepdims=True)   # [TR, 1]


def diffusion_loss(predicted_noise, target_noise, timesteps=None, *,
                   loss_type: str = "mse", huber_delta: float = 1.0,
                   block_bytes: int = 4 * 1024 * 1024,
                   lane_tile=None, row_tile: int = 512):
    """JAX/Pallas equivalent of DiffusionLoss.forward.

    predicted_noise, target_noise: [B, C, H, W] (any dtype; bf16 passes through)
    timesteps: optional [B]
    returns: scalar f32 loss
    """
    assert predicted_noise.shape == target_noise.shape
    B = predicted_noise.shape[0]
    D = int(math.prod(predicted_noise.shape[1:]))
    itemsize = jnp.dtype(predicted_noise.dtype).itemsize

    # Copy-free restructure: [B, D] -> [f*B, D/f] packs up to 8 sublane rows
    # per sample without any HBM padding.
    f = _largest_row_factor(D)
    R = f * B
    Dc = D // f

    # Row tile: divisor of R, multiple of the (dtype-dependent) sublane
    # quantum, preferring >= 2 row blocks for the megacore "parallel" axis.
    sublane_q = max(8, 32 // itemsize)          # 8 (f32), 16 (bf16), 32 (int8)
    tr = _pick_row_tile(R, sublane_q, row_tile)
    n_r = R // tr

    # Lane tile: multiple of 128, sized from a per-input-per-buffer VMEM byte
    # budget with a 512-lane floor (keep per-row DMA chunks >= 2 KiB).
    td_full = _round_up(Dc, 128)
    rows_pad = _round_up(max(tr, 1), 8)
    budget_td = max(128, (block_bytes // (rows_pad * itemsize)) // 128 * 128)
    td = min(td_full, budget_td)
    td = max(td, min(512, td_full))
    if lane_tile is not None:                    # explicit override (tests)
        td = min(td, max(128, (int(lane_tile) // 128) * 128), td_full)
    n_j = pl.cdiv(Dc, td)
    ragged = (Dc % td) != 0

    pred_rows = predicted_noise.reshape(R, Dc)   # free reshape, dtype preserved
    tgt_rows = target_noise.reshape(R, Dc)

    kernel = functools.partial(
        _diffusion_loss_kernel,
        loss_type=loss_type,
        huber_delta=float(huber_delta),
        valid_cols=Dc,
        td=td,
        ragged=ragged,
    )

    in_block_bytes = rows_pad * td * itemsize
    vmem_needed = 2 * 2 * in_block_bytes + 2 * (8 * 128 * 4)
    vmem_limit = int(min(48 * 1024 * 1024, max(16 * 1024 * 1024, 2 * vmem_needed)))

    cost = pl.CostEstimate(
        flops=4 * B * D,
        transcendentals=0,
        bytes_accessed=2 * B * D * itemsize + R * 4,
    )

    row_sums = pl.pallas_call(
        kernel,
        out_shape=jax.ShapeDtypeStruct((R, 1), jnp.float32),
        grid_spec=pltpu.PrefetchScalarGridSpec(
            num_scalar_prefetch=0,
            grid=(n_r, n_j),
            in_specs=[
                pl.BlockSpec((tr, td), lambda i, j: (i, j)),
                pl.BlockSpec((tr, td), lambda i, j: (i, j)),
            ],
            out_specs=pl.BlockSpec((tr, 1), lambda i, j: (i, 0)),
        ),
        compiler_params=pltpu.CompilerParams(
            dimension_semantics=("parallel", "arbitrary"),
            vmem_limit_bytes=vmem_limit,
        ),
        cost_estimate=cost,
    )(pred_rows, tgt_rows)

    # O(B) epilogue in the wrapper: per-sample mean, sigmoid timestep
    # weighting, and batch mean.
    per_sample = jnp.sum(row_sums.reshape(B, f), axis=1) * (1.0 / float(D))
    if timesteps is not None:
        w = 1.0 / (1.0 + jnp.exp(-0.01 * (timesteps.astype(jnp.float32) - 500.0)))
        per_sample = per_sample * w
    return jnp.mean(per_sample)


def combined_loss(model_output: dict, targets: dict, *,
                  diffusion_weight: float = 1.0,
                  loss_type: str = "mse", huber_delta: float = 1.0):
    """Pallas-backed subset of CombinedLoss.forward (diffusion term)."""
    # TODO(synk): PerceptualLoss needs pretrained VGG16 conv features (no in-script weights) -> not implemented.
    # TODO(synk): MathematicalAwareLoss (dict-driven cross-entropy) and ColorHarmonyLoss (RGB->HSV hue variance) are left to plain JAX; not needed for the diffusion path exercised here.
    losses = {}
    total = 0.0
    if "predicted_noise" in model_output and "target_noise" in targets:
        d = diffusion_loss(model_output["predicted_noise"],
                           targets["target_noise"],
                           targets.get("timesteps"),
                           loss_type=loss_type, huber_delta=huber_delta)
        losses["diffusion"] = d
        total = total + diffusion_weight * d
    losses["total"] = total
    return total, losses


def _reference(pred, tgt, ts, loss_type, huber_delta):
    """Pure-JAX reference mirroring the PyTorch semantics."""
    diff = pred.astype(jnp.float32) - tgt.astype(jnp.float32)
    if loss_type == "mse":
        elem = diff * diff
    elif loss_type == "mae":
        elem = jnp.abs(diff)
    else:  # huber
        ad = jnp.abs(diff)
        elem = jnp.where(ad <= huber_delta,
                         0.5 * diff * diff,
                         huber_delta * (ad - 0.5 * huber_delta))
    loss = elem.reshape(elem.shape[0], -1).mean(axis=1)
    if ts is not None:
        w = 1.0 / (1.0 + jnp.exp(-0.01 * (ts.astype(jnp.float32) - 500.0)))
        loss = loss * w
    return loss.mean()


if __name__ == "__main__":
    key = jax.random.PRNGKey(0)
    ok = True

    configs = [
        # (shape, dtype, extra kwargs)
        ((2, 4, 16, 16), jnp.float32, {}),                         # D%8==0 -> free restructure, 2 parallel row blocks
        ((2, 3, 7, 9),   jnp.float32, {}),                         # odd D -> f=1, ragged boundary block masked in-kernel
        ((4, 4, 16, 32), jnp.float32, dict(lane_tile=128, row_tile=8)),  # multi D-tile accumulation into resident out_ref
        ((2, 3, 7, 13),  jnp.float32, dict(lane_tile=128)),        # ragged + multi D-tile
        ((2, 4, 16, 16), jnp.bfloat16, {}),                        # bf16 HBM passthrough, f32 accumulation
    ]

    for (shape, dtype, kwargs) in configs:
        key, k1, k2, k3 = jax.random.split(key, 4)
        B = shape[0]
        pred = jax.random.normal(k1, shape, dtype=jnp.float32).astype(dtype)
        tgt = jax.random.normal(k2, shape, dtype=jnp.float32).astype(dtype)
        ts = jax.random.randint(k3, (B,), 0, 1000).astype(jnp.float32)
        tol = 1e-5 if dtype == jnp.float32 else 1e-3
        for lt in ("mse", "mae", "huber"):
            for use_ts in (True, False):
                ts_arg = ts if use_ts else None
                got = diffusion_loss(pred, tgt, ts_arg, loss_type=lt,
                                     huber_delta=1.0, **kwargs)
                got = jax.block_until_ready(got)
                want = _reference(pred, tgt, ts_arg, lt, 1.0)
                if not jnp.allclose(got, want, rtol=tol, atol=tol):
                    ok = False
                    print(f"MISMATCH shape={shape} dtype={dtype} loss={lt} "
                          f"ts={use_ts}: {got} vs {want}")

    # CombinedLoss-style entry point (diffusion term only).
    key, k1, k2, k3 = jax.random.split(key, 4)
    pred = jax.random.normal(k1, (2, 4, 16, 16), jnp.float32)
    tgt = jax.random.normal(k2, (2, 4, 16, 16), jnp.float32)
    ts = jax.random.randint(k3, (2,), 0, 1000).astype(jnp.float32)
    total, losses = combined_loss({"predicted_noise": pred},
                                  {"target_noise": tgt, "timesteps": ts})
    total = jax.block_until_ready(total)
    want = _reference(pred, tgt, ts, "mse", 1.0)
    if not jnp.allclose(total, want, rtol=1e-5, atol=1e-6):
        ok = False
        print(f"MISMATCH combined_loss: {total} vs {want}")

    if ok:
        print("KERNEL_OK")
</pallas_src>

<mosaic_0001>
module attributes {stable_mosaic.version = 11 : i64} {
  func.func @_diffusion_loss_kernel(%arg0: i32, %arg1: i32, %arg2: memref<8x128xf32, #tpu.memory_space<vmem>>, %arg3: memref<8x128xf32, #tpu.memory_space<vmem>>, %arg4: memref<8x1xf32, #tpu.memory_space<vmem>>) attributes {dimension_semantics = [#tpu.dimension_semantics<parallel>, #tpu.dimension_semantics<arbitrary>], iteration_bounds = array<i64: 2, 1>, scalar_prefetch = 0 : i64, scratch_operands = 0 : i64, tpu.core_type = #tpu.core_type<tc>, window_params = [{transform_indices = @transform_0, window_bounds = array<i64: 8, 128>}, {transform_indices = @transform_1, window_bounds = array<i64: 8, 128>}, {transform_indices = @transform_2, window_bounds = array<i64: 8, 1>}]} {
    %c0_i32 = arith.constant 0 : i32
    %0 = arith.cmpi eq, %arg1, %c0_i32 : i32
    %1 = arith.extui %0 : i1 to i32
    %c0_i32_0 = arith.constant 0 : i32
    %2 = arith.cmpi ne, %1, %c0_i32_0 : i32
    scf.if %2 {
      %cst_8 = arith.constant 0.000000e+00 : f32
      %12 = vector.broadcast %cst_8 : f32 to vector<8x1xf32>
      %c0_9 = arith.constant 0 : index
      %c0_10 = arith.constant 0 : index
      %13 = vector.load %arg4[%c0_9, %c0_10] : memref<8x1xf32, #tpu.memory_space<vmem>>, vector<8x1xf32>
      tpu.vector_store %arg4[%c0_9, %c0_10], %12 {strides = array<i32>} : memref<8x1xf32, #tpu.memory_space<vmem>>, vector<8x1xf32>,
    } else {
    }
    %c0 = arith.constant 0 : index
    %c0_1 = arith.constant 0 : index
    %3 = vector.load %arg2[%c0, %c0_1] : memref<8x128xf32, #tpu.memory_space<vmem>>, vector<8x128xf32>
    %c0_2 = arith.constant 0 : index
    %c0_3 = arith.constant 0 : index
    %4 = vector.load %arg3[%c0_2, %c0_3] : memref<8x128xf32, #tpu.memory_space<vmem>>, vector<8x128xf32>
    %5 = arith.subf %3, %4 : vector<8x128xf32>
    %6 = arith.mulf %5, %5 : vector<8x128xf32>
    %c0_4 = arith.constant 0 : index
    %c0_5 = arith.constant 0 : index
    %7 = vector.load %arg4[%c0_4, %c0_5] : memref<8x1xf32, #tpu.memory_space<vmem>>, vector<8x1xf32>
    %cst = arith.constant dense<0.000000e+00> : vector<8xf32>
    %8 = vector.multi_reduction <add>, %6, %cst [1] : vector<8x128xf32> to vector<8xf32>
    %9 = vector.shape_cast %8 : vector<8xf32> to vector<8x1xf32>
    %10 = arith.addf %7, %9 : vector<8x1xf32>
    %c0_6 = arith.constant 0 : index
    %c0_7 = arith.constant 0 : index
    %11 = vector.load %arg4[%c0_6, %c0_7] : memref<8x1xf32, #tpu.memory_space<vmem>>, vector<8x1xf32>
    tpu.vector_store %arg4[%c0_6, %c0_7], %10 {strides = array<i32>} : memref<8x1xf32, #tpu.memory_space<vmem>>, vector<8x1xf32>,
    return
  }
  func.func @transform_0(%arg0: i32, %arg1: i32) -> (i32, i32) {
    %c0_i32 = arith.constant 0 : i32
    return %arg0, %arg1 : i32, i32
  }
  func.func @transform_1(%arg0: i32, %arg1: i32) -> (i32, i32) {
    %c0_i32 = arith.constant 0 : i32
    return %arg0, %arg1 : i32, i32
  }
  func.func @transform_2(%arg0: i32, %arg1: i32) -> (i32, i32) {
    %c0_i32 = arith.constant 0 : i32
    %c0_i32_0 = arith.constant 0 : i32
    return %arg0, %c0_i32 : i32, i32
  }
}

</mosaic_0001>

<bundles_post_ra>
// kernel: tpu_custom_call.1
= control target key start
LH: loop header
LB: loop body
LE: loop exit
PB: predicated region body
PF: predicated region fallthrough
CT: control target
= control target key end

     0   :  { %7 = vsyncpa [#allocation3], 0  ;;  %s709_s0 = inlined_call_operand.hbm [shape: f32[16,128], index: 0, kind: input, shape index: {}]   ;;  %s710_s1 = inlined_call_operand.hbm [shape: f32[16,128], index: 1, kind: input, shape index: {}]   ;;  %s711_s2 = inlined_call_operand.vmem [shape: f32[16,1], index: 2, kind: output, shape index: {}]  }
   0x1   :  { %9 = vsyncpa [#allocation3 + $0x1], 0 }
   0x2   :  { %10 = vsyncpa [#allocation5], 0 }
   0x3   :  { %12 = vsyncpa [#allocation5 + $0x1], 0  ;;  %s537_s9 = smov 0   ;;  %s539_s10 = smov 0  }
   0x4   :  { %s541_s11 = smov 0   ;;  %s543_s12 = smov 0  }
   0x5   :  { %s545_s13 = smov 0   ;;  %s547_s14 = smov 0  }
   0x6 LB: > { %s328_s15 = sadd.s32 4294967295, %s517_s14   ;;  %s30_s16 = sadd.s32 1, %s513_s13  ;;  %s517_s14 = sphi %s547_s14, %s18_s14   ;;  %s513_s13 = sphi %s545_s13, %s725_s13   ;;  %s509_s12 = sphi %s543_s12, %s724_s12   ;;  %s505_s11 = sphi %s541_s11, %s723_s11   ;;  %s501_s10 = sphi %s539_s10, %s722_s10   ;;  %s497_s9 = sphi %s537_s9, %s721_s9  }
   0x7   : > { %p32_p0 = scmp.ge.s32.totalorder %s30_s16, 2  ;;  %s39_s17 = sadd.s32 1, %s505_s11 }
   0x8   : > { %p46_p1 = scmp.ne.s32.totalorder %s505_s11, %s501_s10  ;;  %p47_p2 = scmp.eq.s32.totalorder %s517_s14, 0 }
   0x9   : > { %s727_s16 = smov (%p32_p0, %s30_s16), 0  ;;  %p52_p4 = scmp.ne.s32.totalorder %s501_s10, %s497_s9 }
   0xa   : > { %p573_p3 = por %p47_p2, %p46_p1  ;;  %s34_s19 = ssub.s32 %s513_s13, %s727_s16 }
   0xb   : > { %p53_p5 = scmp.eq.s32.totalorder %s328_s15, 0  ;;  %p37_p6 = scmp.eq.s32.totalorder %s34_s19, 0 }
   0xc   : > { %p353_p8 = scmp.lt.s32.totalorder %s517_s14, 2  ;;  %s589_s22 = sand.u32 1, %s505_s11  }
   0xd   : > { %p580_p7 = por %p53_p5, %p52_p4  ;;  %s333_s23 = sshll.u32 %s513_s13, 7 }
   0xe   : > { %s586_s21 = scalar_select %p37_p6, %s505_s11, %s39_s17  }
   0xf   : > { %s714_s20 = scalar_select %p580_p7, 1, 0 }
  0x10   : > { %s332_s24 = sshll.u32 %s589_s22, 3  ;;  %s598_s27 = scalar_lea.hbm %s709_s0, %s333_s23 }
  0x11   : > { %s134_s28 = scalar_lea.vmem [#allocation2], %s332_s24  ;;  %p604_p9 = pnand %p353_p8, %p573_p3 }
  0x12   : > { %s142_s29 = sshll.u32 %s134_s28, 4  ;;  %s131_s3 = scalar_lea.sflag [#allocation3], %s589_s22  ;;  %s608_s29 = int_to_ptr.vmem [resolvable:$true] %s142_s29 }
  0x13   : > { %s403_s4 = scalar_lea.hbm %s598_s27, 128  ;;  %p405_p13 = pneg %p604_p9 }
  0x14   : > { %p404_p12 = scmp.ne.s32.totalorder %s598_s27, %s403_s4  ;;  %s408_s7 = scalar_lea.hbm %s709_s0, 256 }
  0x15   : > { %p409_p2 = scmp.lt.u32.totalorder %s598_s27, %s709_s0  ;;  %p410_p3 = scmp.lt.u32.totalorder %s408_s7, %s403_s4 }
  0x16   : > { %p406_p0 = pnand %p405_p13, %p404_p12  ;;  %p412_p5 = scmp.lt.u32.totalorder %s403_s4, %s598_s27 }
  0x17   : > { %p411_p4 = por %p410_p3, %p409_p2 }
  0x18   : > { %p407_p1 = pneg %p406_p0 }
  0x19   : > { %p413_p6 = por %p412_p5, %p411_p4 }
  0x1b   : > { %p414_p8 = pnand %p413_p6, %p407_p1 }
  0x1d   : > { %417 = shalt.err (!%p414_p8)
}
  0x1e   : > { %s418_s15 = scalar_lea.vmem %s608_s29, 128  ;;  %s519_s17 = smov [#allocation2]  }
  0x1f   : > { %p419_p12 = scmp.ne.s32.totalorder %s608_s29, %s418_s15  ;;  %s423_s18 = sshll.u32 %s519_s17, 4  ;;  %s424_s18 = int_to_ptr.vmem [resolvable:$false] %s423_s18 }
  0x20   : > { %s425_s19 = scalar_lea.vmem %s424_s18, 256  ;;  %p426_p11 = scmp.lt.s32.totalorder %s608_s29, %s424_s18 }
  0x21   : > { %p421_p0 = pnand %p419_p12, %p405_p13  ;;  %p427_p2 = scmp.lt.s32.totalorder %s425_s19, %s418_s15 }
  0x23   : > { %p422_p10 = pneg %p421_p0  ;;  %p428_p3 = por %p427_p2, %p426_p11 }
  0x25   : > { %p429_p4 = pnand %p428_p3, %p422_p10 }
  0x27   : > { %432 = shalt.err (!%p429_p4)
}
  0x28   : > { %349 = dma.hbm_to_vmem [thread:$0]  (!%p604_p9), %s598_s27, 128, %s608_s29, %s131_s3  }
  0x29   : > { %p716_p1 = scmp.lt.s32.totalorder %s517_s14, 3  ;;  %p717_p5 = scmp.ge.s32.totalorder %s517_s14, 1 }
  0x2a   : > { %s651_s4 = scalar_lea.hbm %s710_s1, %s333_s23  ;;  %s153_s5 = scalar_lea.vmem [#allocation4], %s332_s24 }
  0x2b   : > { %p642_p6 = pnand %p717_p5, %p716_p1  ;;  %s161_s6 = sshll.u32 %s153_s5, 4  ;;  %s162_s6 = int_to_ptr.vmem [resolvable:$true] %s161_s6 }
  0x2c   : > { %s150_s27 = scalar_lea.sflag [#allocation5], %s589_s22  ;;  %s433_s29 = scalar_lea.hbm %s651_s4, 128 }
  0x2d   : > { %s718_s25 = scalar_select %p642_p6, 1, 0 }
  0x2e   : > { %p434_p10 = scmp.ne.s32.totalorder %s651_s4, %s433_s29  ;;  %s438_s23 = scalar_lea.hbm %s710_s1, 256 }
  0x2f   : > { %p439_p12 = scmp.lt.u32.totalorder %s651_s4, %s710_s1  ;;  %p440_p0 = scmp.lt.u32.totalorder %s438_s23, %s433_s29 }
  0x30   : > { %p436_p11 = pnand %p434_p10, %p405_p13  ;;  %p442_p3 = scmp.lt.u32.totalorder %s433_s29, %s651_s4 }
  0x31   : > { %p441_p2 = por %p440_p0, %p439_p12 }
  0x32   : > { %p437_p8 = pneg %p436_p11 }
  0x33   : > { %p443_p4 = por %p442_p3, %p441_p2 }
  0x35   : > { %p444_p1 = pnand %p443_p4, %p437_p8 }
  0x37   : > { %447 = shalt.err (!%p444_p1)
}
  0x38   : > { %s448_s22 = scalar_lea.vmem %s162_s6, 128  ;;  %s520_s24 = smov [#allocation4]  }
  0x39   : > { %p449_p5 = scmp.ne.s32.totalorder %s162_s6, %s448_s22  ;;  %s453_s15 = sshll.u32 %s520_s24, 4  ;;  %s454_s15 = int_to_ptr.vmem [resolvable:$false] %s453_s15 }
  0x3a   : > { %s455_s17 = scalar_lea.vmem %s454_s15, 256  ;;  %p456_p7 = scmp.lt.s32.totalorder %s162_s6, %s454_s15 }
  0x3b   : > { %p451_p10 = pnand %p449_p5, %p405_p13  ;;  %p457_p6 = scmp.lt.s32.totalorder %s455_s17, %s448_s22 }
  0x3d   : > { %p452_p11 = pneg %p451_p10  ;;  %p458_p0 = por %p457_p6, %p456_p7 }
  0x3f   : > { %p459_p12 = pnand %p458_p0, %p452_p11 }
  0x41   : > { %462 = shalt.err (!%p459_p12)
}
  0x42   : > { %352 = dma.hbm_to_vmem [thread:$0]  (!%p604_p9), %s651_s4, 128, %s162_s6, %s150_s27  }
  0x43   : > { %p719_p8 = scmp.ne.s32.totalorder %s718_s25, 0 }
  0x44   : > { %s172_s18 = sand.u32 (!%p719_p8), 1, %s501_s10   ;;  %p720_p13 = scmp.ne.s32.totalorder (!%p719_p8), %s714_s20, 0 }
  0x45   : > { %170 = sbr.rel (%p719_p8) target bundleno = 229 (0xe5), region = 28  ;;  %s337_s19 = sshll.u32 (!%p719_p8), %s172_s18, 3 }
  0x46   : > { %s173_s26 = scalar_lea.sflag (!%p719_p8), [#allocation3], %s172_s18  ;;  %s176_s28 = scalar_lea.vmem (!%p719_p8), [#allocation2], %s337_s19 }
  0x4c   : > { %488 = dma.done.wait (%p720_p13), %s173_s26, 128  }
  0x4d   : > { %490 = vsyncadd (%p720_p13), %s173_s26, 4294967168  ;;  %s182_s5 = scalar_lea.sflag [#allocation5], %s172_s18  ;;  %s185_s29 = scalar_lea.vmem [#allocation4], %s337_s19 }
  0x4e   : > { %492 = dma.done.wait (%p720_p13), %s182_s5, 128  }
  0x4f   : > { %494 = vsyncadd (%p720_p13), %s182_s5, 4294967168  ;;  %p210_p7 = scmp.lt.s32.totalorder %s509_s12, 1  ;;  %vm218_vm0 = vcmask 7168   ;;  %v521_v0 = vmov 0.0   ;;  %v220_v1 = vld [vmem:[%s176_s28] sm:$0xff]  ;;  %v221_v2 = vld [vmem:[%s185_s29] sm:$0xff] }
  0x50   : > { %v222_v3 = vsub.f32 %v220_v1, %v221_v2 }
  0x51   : > { %s729_s12 = smov (!%p210_p7, %s509_s12), 1 }
  0x52   : > { %s339_s30 = sshll.u32 %s729_s12, 3  ;;  %v223_v4 = vmul.f32 %v222_v3, %v222_v3 }
  0x53   : > { %s213_s6 = scalar_lea.vmem %s711_s2, %s339_s30 }
  0x54   : > { %219 = vst.msk [vmem:[%s213_s6] sm:$0xff] %vm218_vm0, %v521_v0  ;;  %225 = vadd.xlane.f32.xlu0 %v223_v4 }
  0x5b   : > { %v224_v5 = vld [vmem:[%s213_s6] sm:$0xff] }
  0xe1   : > { %v226_v6 = vpop.xlane.xlu0 %225 }
  0xe2   : > { %v227_v7 = vadd.f32 %v226_v6, %v224_v5 }
  0xe4   : > { %229 = vst.msk [vmem:[%s213_s6] sm:$0xff] %vm218_vm0, %v227_v7 }
  0xe5 PF: > { %s18_s14 = sadd.s32 1, %s517_s14   ;;  %s721_s9 = smov %s501_s10 }
  0xe6   : > { %p15_p9 = scmp.ge.s32.totalorder %s18_s14, 4   ;;  %s722_s10 = smov %s505_s11 }
  0xe7   : > { %s723_s11 = smov %s586_s21  ;;  %s724_s12 = smov %s513_s13 }
  0xe8   : > { %s725_s13 = smov %s727_s16  ;;  %17 = sbr.rel (!%p15_p9) target bundleno = 6 (0x6), region = 85 }
  0xef   :  { %249 = vsyncpa [#allocation3], 1 }
  0xf0   :  { %251 = vsyncpa [#allocation3 + $0x1], 1 }
  0xf1   :  { %252 = vsyncpa [#allocation5], 1 }
  0xf2   :  { %254 = vsyncpa [#allocation5 + $0x1], 1 }

</bundles_post_ra>
